<compile_context>
chip_gen: v5e
topology: v5e:2x2
jax: 0.10.0
libtpu: 0.0.40
codegen_flags: <defaults>
</compile_context>

<pallas_src>
from functools import partial

import numpy as np
import jax
import jax.numpy as jnp
from jax import lax
from jax.experimental import pallas as pl
from jax.experimental.pallas import tpu as pltpu


_LN_EPS = 1e-5
_NEG_INF = -1e30
_MM_DTYPE = jnp.bfloat16      # matmul operand dtype (accumulation stays f32)
_APPROX_RECIP = True          # approx softmax denominator (EUP); set False for exact


# ------------------------------ kernel helpers ------------------------------

def _hardswish(x):
    # PyTorch nn.Hardswish: x * relu6(x + 3) / 6
    return x * jnp.clip(x + 3.0, 0.0, 6.0) * (1.0 / 6.0)


def _layernorm_f32(x, gamma, beta, eps=_LN_EPS):
    x = x.astype(jnp.float32)
    mu = jnp.mean(x, axis=-1, keepdims=True)
    xc = x - mu
    var = jnp.mean(xc * xc, axis=-1, keepdims=True)
    return xc * lax.rsqrt(var + eps) * gamma.astype(jnp.float32) + beta.astype(jnp.float32)


def _row_tile(m, cap=1024):
    # full-array block for small M; otherwise 1024-row tiles (multiple of 8,
    # ragged tail handled by Pallas write masking).  On v7x (64 MiB VMEM) a
    # smaller cap may be preferable for very wide C.
    return m if m <= cap else cap


# ----------------------- kernel 1: LN1 + q projection -----------------------

def _ln_q_kernel(x_ref, g_ref, b_ref, qw_ref, xn_ref, q_ref):
    # NOTE: on a ragged boundary tile the padding rows hold unspecified data;
    # LN/matmul results for those rows are garbage but are masked on writeback
    # (row-independent ops), so they never escape the kernel.
    xn = _layernorm_f32(x_ref[...], g_ref[...], b_ref[...])          # (tm, C) f32
    xn_ref[...] = xn.astype(xn_ref.dtype)
    # attention scale is folded into qw on the host; bf16 operands, f32 acc.
    q = jnp.dot(xn.astype(qw_ref.dtype), qw_ref[...],
                preferred_element_type=jnp.float32)
    q_ref[...] = q.astype(q_ref.dtype)


def ln_q(x2d, gamma, beta, qw_scaled):
    M, C = x2d.shape
    tm = _row_tile(M)
    return pl.pallas_call(
        _ln_q_kernel,
        out_shape=(jax.ShapeDtypeStruct((M, C), x2d.dtype),
                   jax.ShapeDtypeStruct((M, C), _MM_DTYPE)),
        grid=(pl.cdiv(M, tm),),
        in_specs=[pl.BlockSpec((tm, C), lambda i: (i, 0)),
                  pl.BlockSpec((1, C), lambda i: (0, 0)),
                  pl.BlockSpec((1, C), lambda i: (0, 0)),
                  pl.BlockSpec((C, C), lambda i: (0, 0))],
        out_specs=(pl.BlockSpec((tm, C), lambda i: (i, 0)),
                   pl.BlockSpec((tm, C), lambda i: (i, 0))),
        compiler_params=pltpu.CompilerParams(dimension_semantics=("parallel",)),
    )(x2d, gamma.reshape(1, C), beta.reshape(1, C), qw_scaled)


# --------------- kernel 2: pool + depthwise 3x3(pool), fused ----------------

def _pool_dw_kernel(x_ref, w_ref, b_ref, o_ref, xp_ref, *, Hp, Wp):
    x = x_ref[0].astype(jnp.float32)                                 # (Hp, Wp, C)
    C = x.shape[-1]
    # Zero only the 1-wide border each step (interior is fully overwritten);
    # safe under megacore sharding since nothing relies on scratch persistence.
    zrow = jnp.zeros((1, Wp + 2, C), jnp.float32)
    xp_ref[0:1, :, :] = zrow
    xp_ref[Hp + 1:Hp + 2, :, :] = zrow
    zcol = jnp.zeros((Hp + 2, 1, C), jnp.float32)
    xp_ref[:, 0:1, :] = zcol
    xp_ref[:, Wp + 1:Wp + 2, :] = zcol
    xp_ref[1:Hp + 1, 1:Wp + 1, :] = x
    w = w_ref[...].astype(jnp.float32)                               # (3, 3, C)
    acc = x + b_ref[0, :].astype(jnp.float32)                        # residual + conv bias
    for ky in range(3):
        for kx in range(3):
            if ky == 1 and kx == 1:
                acc = acc + x * w[1, 1]                              # center tap from regs
            else:
                # per-tap ref slice: bounds vreg pressure, lets vld slots pipeline
                acc = acc + xp_ref[ky:ky + Hp, kx:kx + Wp, :] * w[ky, kx]
    o_ref[0] = acc.astype(o_ref.dtype)


def pool_plus_dwconv(x_nhwc, w, b):
    B, Hp, Wp, C = x_nhwc.shape
    return pl.pallas_call(
        partial(_pool_dw_kernel, Hp=Hp, Wp=Wp),
        out_shape=jax.ShapeDtypeStruct((B, Hp, Wp, C), x_nhwc.dtype),
        grid=(B,),
        in_specs=[pl.BlockSpec((1, Hp, Wp, C), lambda i: (i, 0, 0, 0)),
                  pl.BlockSpec((3, 3, C), lambda i: (0, 0, 0)),
                  pl.BlockSpec((1, C), lambda i: (0, 0))],
        out_specs=pl.BlockSpec((1, Hp, Wp, C), lambda i: (i, 0, 0, 0)),
        scratch_shapes=[pltpu.VMEM((Hp + 2, Wp + 2, C), jnp.float32)],
        compiler_params=pltpu.CompilerParams(dimension_semantics=("parallel",)),
    )(x_nhwc, w, b.reshape(1, C))


# --------------------- kernel 3: pool-LN + kv projection --------------------

def _ln_kv_kernel(p_ref, g_ref, b_ref, w_ref, k_ref, v_ref):
    C = k_ref.shape[-1]
    xn = _layernorm_f32(p_ref[...], g_ref[...], b_ref[...])          # (tm, C) f32
    kv = jnp.dot(xn.astype(w_ref.dtype), w_ref[...],
                 preferred_element_type=jnp.float32)                 # one (tm,C)x(C,2C)
    k_ref[...] = kv[:, :C].astype(k_ref.dtype)
    v_ref[...] = kv[:, C:].astype(v_ref.dtype)


def ln_kv(pools2d, gamma, beta, kv_w):
    M, C = pools2d.shape
    tm = _row_tile(M)
    return pl.pallas_call(
        _ln_kv_kernel,
        out_shape=(jax.ShapeDtypeStruct((M, C), _MM_DTYPE),
                   jax.ShapeDtypeStruct((M, C), _MM_DTYPE)),
        grid=(pl.cdiv(M, tm),),
        in_specs=[pl.BlockSpec((tm, C), lambda i: (i, 0)),
                  pl.BlockSpec((1, C), lambda i: (0, 0)),
                  pl.BlockSpec((1, C), lambda i: (0, 0)),
                  pl.BlockSpec((C, 2 * C), lambda i: (0, 0))],
        out_specs=(pl.BlockSpec((tm, C), lambda i: (i, 0)),
                   pl.BlockSpec((tm, C), lambda i: (i, 0))),
        compiler_params=pltpu.CompilerParams(dimension_semantics=("parallel",)),
    )(pools2d, gamma.reshape(1, C), beta.reshape(1, C), kv_w)


# ---------- kernel 4: multi-head attention + out-proj + residual ------------

def _attn_kernel(q_ref, k_ref, v_ref, xr_ref, pw_ref, pb_ref, o_ref,
                 *, num_heads, p_valid):
    q = q_ref[0]                                                     # (tn, C) bf16, pre-scaled
    k = k_ref[0]                                                     # (P_pad, C) bf16
    v = v_ref[0]                                                     # (P_pad, C) bf16
    C = q.shape[-1]
    hd = C // num_heads
    P_pad = k.shape[0]
    # mask pad keys (pools padded to a lane-dense multiple of 128)
    col = lax.broadcasted_iota(jnp.int32, (1, P_pad), 1)
    key_bias = jnp.where(col < p_valid, 0.0, _NEG_INF).astype(jnp.float32)
    heads = []
    for h in range(num_heads):
        lo = h * hd
        qh = q[:, lo:lo + hd]
        kh = k[:, lo:lo + hd]
        # contract last dim of both (canonical flash-attention score pattern)
        s = lax.dot_general(qh, kh, (((1,), (1,)), ((), ())),
                            preferred_element_type=jnp.float32)      # (tn, P_pad)
        s = s + key_bias
        s = s - jnp.max(s, axis=-1, keepdims=True)
        e = jnp.exp(s)
        p = e * pl.reciprocal(jnp.sum(e, axis=-1, keepdims=True), approx=_APPROX_RECIP)
        oh = jnp.dot(p.astype(v.dtype), v[:, lo:lo + hd],
                     preferred_element_type=jnp.float32)             # (tn, hd)
        heads.append(oh.astype(q.dtype))
    o_cat = jnp.concatenate(heads, axis=-1)                          # (tn, C) bf16
    # single full-C output projection (MXU-filled contraction) + bias + residual
    y = jnp.dot(o_cat, pw_ref[...], preferred_element_type=jnp.float32)
    y = y + pb_ref[...].astype(jnp.float32) + xr_ref[0].astype(jnp.float32)
    o_ref[0] = y.astype(o_ref.dtype)


def attention_proj(q, k, v, xres, proj_w, proj_b, num_heads, p_valid):
    B, N, C = q.shape
    P = k.shape[1]
    tn = N if N <= 512 else 512        # row-tile over queries; k/v/weights resident
    return pl.pallas_call(
        partial(_attn_kernel, num_heads=num_heads, p_valid=p_valid),
        out_shape=jax.ShapeDtypeStruct((B, N, C), xres.dtype),
        grid=(B, pl.cdiv(N, tn)),
        in_specs=[pl.BlockSpec((1, tn, C), lambda b, n: (b, n, 0)),
                  pl.BlockSpec((1, P, C), lambda b, n: (b, 0, 0)),
                  pl.BlockSpec((1, P, C), lambda b, n: (b, 0, 0)),
                  pl.BlockSpec((1, tn, C), lambda b, n: (b, n, 0)),
                  pl.BlockSpec((C, C), lambda b, n: (0, 0)),
                  pl.BlockSpec((1, C), lambda b, n: (0, 0))],
        out_specs=pl.BlockSpec((1, tn, C), lambda b, n: (b, n, 0)),
        compiler_params=pltpu.CompilerParams(
            dimension_semantics=("parallel", "parallel")),
    )(q, k, v, xres, proj_w, proj_b.reshape(1, C))


# ------ kernel 5: LN2 + IRB (fc1 -> hswish -> dw3x3 -> hswish -> fc2) -------

def _irb_kernel(x_ref, g_ref, bt_ref, w1_ref, b1_ref, dw_ref, db_ref, w2_ref, b2_ref,
                o_ref, hp_ref, *, H, W):
    x = x_ref[0].astype(jnp.float32)                                 # (N, C) residual stream
    xn = _layernorm_f32(x, g_ref[...], bt_ref[...])
    h = jnp.dot(xn.astype(w1_ref.dtype), w1_ref[...],
                preferred_element_type=jnp.float32)                  # fc1 (1x1 conv)
    h = _hardswish(h + b1_ref[...].astype(jnp.float32))              # (N, Ch) f32
    Ch = h.shape[-1]
    h3 = h.reshape(H, W, Ch)
    # zero only the 1-wide border; interior overwritten below
    zrow = jnp.zeros((1, W + 2, Ch), jnp.float32)
    hp_ref[0:1, :, :] = zrow
    hp_ref[H + 1:H + 2, :, :] = zrow
    zcol = jnp.zeros((H + 2, 1, Ch), jnp.float32)
    hp_ref[:, 0:1, :] = zcol
    hp_ref[:, W + 1:W + 2, :] = zcol
    hp_ref[1:H + 1, 1:W + 1, :] = h3
    dw = dw_ref[...].astype(jnp.float32)                             # (3, 3, Ch)
    acc = db_ref[0, :].astype(jnp.float32)                           # conv bias (Ch,)
    for ky in range(3):
        for kx in range(3):
            if ky == 1 and kx == 1:
                acc = acc + h3 * dw[1, 1]                            # center tap from regs
            else:
                acc = acc + hp_ref[ky:ky + H, kx:kx + W, :] * dw[ky, kx]
    acc = _hardswish(acc)
    y = jnp.dot(acc.reshape(H * W, Ch).astype(w2_ref.dtype), w2_ref[...],
                preferred_element_type=jnp.float32)                  # fc2 (1x1 conv)
    y = y + b2_ref[...].astype(jnp.float32) + x                      # + bias + residual
    o_ref[0] = y.astype(o_ref.dtype)


def irb_block(x, H, W, norm_g, norm_b, w1, b1, dw_w, dw_b, w2, b2):
    B, N, C = x.shape
    Ch = w1.shape[1]
    # rough per-step VMEM estimate; raise the scoped limit only when needed
    # TODO(synk): for very large H*W on v7x (64 MiB VMEM) tile over N with
    # halo recompute of the 2 boundary fc1 rows instead of the per-batch grid.
    need = 4 * ((H + 2) * (W + 2) * Ch + 3 * N * Ch + 4 * N * C)
    vmem_limit = None if need <= (24 << 20) else min(int(need * 1.5), 64 << 20)
    return pl.pallas_call(
        partial(_irb_kernel, H=H, W=W),
        out_shape=jax.ShapeDtypeStruct((B, N, C), x.dtype),
        grid=(B,),
        in_specs=[pl.BlockSpec((1, N, C), lambda i: (i, 0, 0)),
                  pl.BlockSpec((1, C), lambda i: (0, 0)),
                  pl.BlockSpec((1, C), lambda i: (0, 0)),
                  pl.BlockSpec((C, Ch), lambda i: (0, 0)),
                  pl.BlockSpec((1, Ch), lambda i: (0, 0)),
                  pl.BlockSpec((3, 3, Ch), lambda i: (0, 0, 0)),
                  pl.BlockSpec((1, Ch), lambda i: (0, 0)),
                  pl.BlockSpec((Ch, C), lambda i: (0, 0)),
                  pl.BlockSpec((1, C), lambda i: (0, 0))],
        out_specs=pl.BlockSpec((1, N, C), lambda i: (i, 0, 0)),
        scratch_shapes=[pltpu.VMEM((H + 2, W + 2, Ch), jnp.float32)],
        compiler_params=pltpu.CompilerParams(
            dimension_semantics=("parallel",), vmem_limit_bytes=vmem_limit),
    )(x, norm_g.reshape(1, C), norm_b.reshape(1, C),
      w1, b1.reshape(1, Ch), dw_w, dw_b.reshape(1, Ch), w2, b2.reshape(1, C))


# ------------------------------ plain-JAX glue ------------------------------

def _adaptive_pool_matrix(in_size, out_size):
    # exact torch adaptive_avg_pool2d bins: [floor(i*I/O), ceil((i+1)*I/O))
    M = np.zeros((out_size, in_size), np.float32)
    for i in range(out_size):
        s = (i * in_size) // out_size
        e = -(-((i + 1) * in_size) // out_size)
        M[i, s:e] = 1.0 / (e - s)
    return jnp.asarray(M)


def adaptive_avg_pool_nhwc(x_nhwc, out_h, out_w):
    # TODO(synk): pooled maps are tiny; kept as plain-JAX einsum glue.
    Mh = _adaptive_pool_matrix(x_nhwc.shape[1], out_h)
    Mw = _adaptive_pool_matrix(x_nhwc.shape[2], out_w)
    y = jnp.einsum('oh,bhwc->bowc', Mh, x_nhwc)
    y = jnp.einsum('pw,bowc->bopc', Mw, y)
    return y


# ------------------------------ module forward ------------------------------

def block_forward(x, H, W, params, num_heads, pool_ratios):
    B, N, C = x.shape
    hd = C // num_heads
    scale = hd ** (-0.5)
    a = params["attn"]
    mlp = params["mlp"]

    # host-side weight prep: fold attention scale into q_w, pre-cast matmul
    # weights to bf16 once (in practice these would be cached).
    qw = (a["q_w"] * scale).astype(_MM_DTYPE)
    kvw = a["kv_w"].astype(_MM_DTYPE)
    pw = a["proj_w"].astype(_MM_DTYPE)
    w1 = mlp["fc1_w"].astype(_MM_DTYPE)
    w2 = mlp["fc2_w"].astype(_MM_DTYPE)

    # LN1 + q projection (scale folded into q_w; q stored in bf16)
    xn2d, q2d = ln_q(x.reshape(B * N, C), params["norm1_g"], params["norm1_b"], qw)
    xn = xn2d.reshape(B, H, W, C)          # NHWC spatial view of normed tokens
    q = q2d.reshape(B, N, C)

    # pooled key/value tokens: adaptive pool (glue) + fused "pool + dwconv(pool)"
    pools = []
    for ratio, (dw_w, dw_b) in zip(pool_ratios, a["d_convs"]):
        ho, wo = round(H / ratio), round(W / ratio)
        if ho == H and wo == W:
            pool_in = xn                                            # ratio==1: identity pool
        else:
            pool_in = adaptive_avg_pool_nhwc(xn, ho, wo)            # (B, ho, wo, C)
        pool = pool_plus_dwconv(pool_in, dw_w, dw_b)
        pools.append(pool.reshape(B, ho * wo, C))
    P = sum(p.shape[1] for p in pools)
    P_pad = -(-P // 128) * 128                                      # lane-dense key count
    if P_pad > P:
        pools.append(jnp.zeros((B, P_pad - P, C), xn2d.dtype))
    # TODO(synk): per-ratio kernels could write directly into a pre-allocated
    # (B, P_pad, C) buffer at static row offsets to avoid this concat round trip.
    pools = jnp.concatenate(pools, axis=1)                          # (B, P_pad, C)

    # pool-LN + kv projection, row-tiled over B*P_pad; k/v stored in bf16
    k2d, v2d = ln_kv(pools.reshape(B * P_pad, C),
                     a["attn_norm_g"], a["attn_norm_b"], kvw)
    k = k2d.reshape(B, P_pad, C)
    v = v2d.reshape(B, P_pad, C)

    # multi-head attention + output projection + residual, tiled over (B, N)
    x = attention_proj(q, k, v, x, pw, a["proj_b"], num_heads, P)

    # LN2 + IRB MLP + residual
    x = irb_block(x, H, W, params["norm2_g"], params["norm2_b"],
                  w1, mlp["fc1_b"], mlp["dw_w"], mlp["dw_b"], w2, mlp["fc2_b"])
    return x


# ------------------------------ parameter init ------------------------------

def init_params(key, dim, num_heads, mlp_ratio, pool_ratios):
    hidden = int(dim * mlp_ratio)
    ks = jax.random.split(key, 12)

    def w(k, shape, scale=0.05):
        return (scale * jax.random.normal(k, shape)).astype(jnp.float32)

    d_convs = [(w(jax.random.fold_in(ks[0], i), (3, 3, dim)),
                w(jax.random.fold_in(ks[1], i), (dim,)))
               for i in range(len(pool_ratios))]

    return {
        "norm1_g": jnp.ones((dim,), jnp.float32),
        "norm1_b": jnp.zeros((dim,), jnp.float32),
        "norm2_g": jnp.ones((dim,), jnp.float32),
        "norm2_b": jnp.zeros((dim,), jnp.float32),
        "attn": {
            "q_w": w(ks[2], (dim, dim)),
            "kv_w": w(ks[3], (dim, 2 * dim)),
            "proj_w": w(ks[4], (dim, dim)),
            "proj_b": w(ks[5], (dim,)),
            "attn_norm_g": jnp.ones((dim,), jnp.float32),
            "attn_norm_b": jnp.zeros((dim,), jnp.float32),
            "d_convs": d_convs,
        },
        "mlp": {
            "fc1_w": w(ks[6], (dim, hidden)),
            "fc1_b": w(ks[7], (hidden,)),
            "dw_w": w(ks[8], (3, 3, hidden)),
            "dw_b": w(ks[9], (hidden,)),
            "fc2_w": w(ks[10], (hidden, dim)),
            "fc2_b": w(ks[11], (dim,)),
        },
    }


if __name__ == "__main__":
    key = jax.random.PRNGKey(0)
    B, H, W, dim = 2, 8, 8, 32
    num_heads = 2
    mlp_ratio = 4.0
    pool_ratios = [1, 2, 3, 4]
    N = H * W

    kx, kp = jax.random.split(key)
    x = jax.random.normal(kx, (B, N, dim), dtype=jnp.float32)
    params = init_params(kp, dim, num_heads, mlp_ratio, pool_ratios)

    out = block_forward(x, H, W, params, num_heads, pool_ratios)
    out = jax.block_until_ready(out)

    assert out.shape == (B, N, dim)
    assert bool(jnp.all(jnp.isfinite(out)))
    print("KERNEL_OK")
</pallas_src>

<mosaic_0001>
module attributes {stable_mosaic.version = 11 : i64} {
  func.func @_ln_q_kernel(%arg0: i32, %arg1: memref<128x32xf32, #tpu.memory_space<vmem>>, %arg2: memref<1x32xf32, #tpu.memory_space<vmem>>, %arg3: memref<1x32xf32, #tpu.memory_space<vmem>>, %arg4: memref<32x32xbf16, #tpu.memory_space<vmem>>, %arg5: memref<128x32xf32, #tpu.memory_space<vmem>>, %arg6: memref<128x32xbf16, #tpu.memory_space<vmem>>) attributes {dimension_semantics = [#tpu.dimension_semantics<parallel>], iteration_bounds = array<i64: 1>, scalar_prefetch = 0 : i64, scratch_operands = 0 : i64, tpu.core_type = #tpu.core_type<tc>, window_params = [{transform_indices = @transform_0, window_bounds = array<i64: 128, 32>}, {pipeline_mode = #tpu.pipeline_mode<synchronous>, transform_indices = @transform_1, window_bounds = array<i64: 1, 32>}, {pipeline_mode = #tpu.pipeline_mode<synchronous>, transform_indices = @transform_2, window_bounds = array<i64: 1, 32>}, {pipeline_mode = #tpu.pipeline_mode<synchronous>, transform_indices = @transform_3, window_bounds = array<i64: 32, 32>}, {transform_indices = @transform_4, window_bounds = array<i64: 128, 32>}, {transform_indices = @transform_5, window_bounds = array<i64: 128, 32>}]} {
    %c0 = arith.constant 0 : index
    %c0_0 = arith.constant 0 : index
    %0 = vector.load %arg1[%c0, %c0_0] : memref<128x32xf32, #tpu.memory_space<vmem>>, vector<128x32xf32>
    %c0_1 = arith.constant 0 : index
    %c0_2 = arith.constant 0 : index
    %1 = vector.load %arg2[%c0_1, %c0_2] : memref<1x32xf32, #tpu.memory_space<vmem>>, vector<1x32xf32>
    %c0_3 = arith.constant 0 : index
    %c0_4 = arith.constant 0 : index
    %2 = vector.load %arg3[%c0_3, %c0_4] : memref<1x32xf32, #tpu.memory_space<vmem>>, vector<1x32xf32>
    %cst = arith.constant dense<0.000000e+00> : vector<128xf32>
    %3 = vector.multi_reduction <add>, %0, %cst [1] : vector<128x32xf32> to vector<128xf32>
    %4 = vector.shape_cast %3 : vector<128xf32> to vector<128x1xf32>
    %cst_5 = arith.constant 3.200000e+01 : f32
    %5 = vector.broadcast %cst_5 : f32 to vector<128x1xf32>
    %6 = arith.divf %4, %5 : vector<128x1xf32>
    %7 = vector.broadcast %6 : vector<128x1xf32> to vector<128x32xf32>
    %8 = arith.subf %0, %7 : vector<128x32xf32>
    %9 = arith.mulf %8, %8 : vector<128x32xf32>
    %cst_6 = arith.constant dense<0.000000e+00> : vector<128xf32>
    %10 = vector.multi_reduction <add>, %9, %cst_6 [1] : vector<128x32xf32> to vector<128xf32>
    %11 = vector.shape_cast %10 : vector<128xf32> to vector<128x1xf32>
    %cst_7 = arith.constant 3.200000e+01 : f32
    %12 = vector.broadcast %cst_7 : f32 to vector<128x1xf32>
    %13 = arith.divf %11, %12 : vector<128x1xf32>
    %cst_8 = arith.constant 9.99999974E-6 : f32
    %14 = vector.broadcast %cst_8 : f32 to vector<128x1xf32>
    %15 = arith.addf %13, %14 : vector<128x1xf32>
    %16 = math.rsqrt %15 : vector<128x1xf32>
    %17 = vector.broadcast %16 : vector<128x1xf32> to vector<128x32xf32>
    %18 = arith.mulf %8, %17 : vector<128x32xf32>
    %19 = vector.broadcast %1 : vector<1x32xf32> to vector<128x32xf32>
    %20 = arith.mulf %18, %19 : vector<128x32xf32>
    %21 = vector.broadcast %2 : vector<1x32xf32> to vector<128x32xf32>
    %22 = arith.addf %20, %21 : vector<128x32xf32>
    %c0_9 = arith.constant 0 : index
    %c0_10 = arith.constant 0 : index
    %23 = vector.load %arg5[%c0_9, %c0_10] : memref<128x32xf32, #tpu.memory_space<vmem>>, vector<128x32xf32>
    tpu.vector_store %arg5[%c0_9, %c0_10], %22 {strides = array<i32>} : memref<128x32xf32, #tpu.memory_space<vmem>>, vector<128x32xf32>,
    %24 = arith.truncf %22 : vector<128x32xf32> to vector<128x32xbf16>
    %c0_11 = arith.constant 0 : index
    %c0_12 = arith.constant 0 : index
    %25 = vector.load %arg4[%c0_11, %c0_12] : memref<32x32xbf16, #tpu.memory_space<vmem>>, vector<32x32xbf16>
    %cst_13 = arith.constant dense<0.000000e+00> : vector<128x32xf32>
    %26 = tpu.matmul %24, %25, %cst_13 {dimension_numbers = #tpu.dot_dimension_numbers<[1], [0], [0], [1], [0, 0, 1, 1], [], []>} : vector<128x32xbf16>, vector<32x32xbf16>, vector<128x32xf32> -> vector<128x32xf32>
    %27 = arith.truncf %26 : vector<128x32xf32> to vector<128x32xbf16>
    %c0_14 = arith.constant 0 : index
    %c0_15 = arith.constant 0 : index
    %28 = vector.load %arg6[%c0_14, %c0_15] : memref<128x32xbf16, #tpu.memory_space<vmem>>, vector<128x32xbf16>
    tpu.vector_store %arg6[%c0_14, %c0_15], %27 {strides = array<i32>} : memref<128x32xbf16, #tpu.memory_space<vmem>>, vector<128x32xbf16>,
    return
  }
  func.func @transform_0(%arg0: i32) -> (i32, i32) {
    %c0_i32 = arith.constant 0 : i32
    %c0_i32_0 = arith.constant 0 : i32
    return %arg0, %c0_i32 : i32, i32
  }
  func.func @transform_1(%arg0: i32) -> (i32, i32) {
    %c0_i32 = arith.constant 0 : i32
    %c0_i32_0 = arith.constant 0 : i32
    %c0_i32_1 = arith.constant 0 : i32
    return %c0_i32, %c0_i32_0 : i32, i32
  }
  func.func @transform_2(%arg0: i32) -> (i32, i32) {
    %c0_i32 = arith.constant 0 : i32
    %c0_i32_0 = arith.constant 0 : i32
    %c0_i32_1 = arith.constant 0 : i32
    return %c0_i32, %c0_i32_0 : i32, i32
  }
  func.func @transform_3(%arg0: i32) -> (i32, i32) {
    %c0_i32 = arith.constant 0 : i32
    %c0_i32_0 = arith.constant 0 : i32
    %c0_i32_1 = arith.constant 0 : i32
    return %c0_i32, %c0_i32_0 : i32, i32
  }
  func.func @transform_4(%arg0: i32) -> (i32, i32) {
    %c0_i32 = arith.constant 0 : i32
    %c0_i32_0 = arith.constant 0 : i32
    return %arg0, %c0_i32 : i32, i32
  }
  func.func @transform_5(%arg0: i32) -> (i32, i32) {
    %c0_i32 = arith.constant 0 : i32
    %c0_i32_0 = arith.constant 0 : i32
    return %arg0, %c0_i32 : i32, i32
  }
}

</mosaic_0001>

<bundles_post_ra>
// kernel: tpu_custom_call.1
= control target key start
LH: loop header
LB: loop body
LE: loop exit
PB: predicated region body
PF: predicated region fallthrough
CT: control target
= control target key end

     0   :  { %vm38_vm0 = vcmask 261120   ;;  %v651_v32 = vmov 32.0   ;;  %s1381_s0 = inlined_call_operand.vmem [shape: f32[128,32], index: 0, kind: input, shape index: {}]   ;;  %s1382_s1 = inlined_call_operand.vmem [shape: f32[1,32], index: 1, kind: input, shape index: {}]   ;;  %s1383_s2 = inlined_call_operand.vmem [shape: f32[1,32], index: 2, kind: input, shape index: {}]   ;;  %s1384_s3 = inlined_call_operand.vmem [shape: bf16[32,32], index: 3, kind: input, shape index: {}]   ;;  %s1385_s4 = inlined_call_operand.vmem [shape: f32[128,32], index: 4, kind: output, shape index: {0}]   ;;  %s1386_s5 = inlined_call_operand.vmem [shape: bf16[128,32], index: 5, kind: output, shape index: {1}]  }
   0x1   :  { %v32_v0 = vld [vmem:[%s1381_s0 + $0x60] sm:$0xff]  ;;  %v700_v6 = vld [vmem:[%s1381_s0 + $0x68] sm:$0xff]  ;;  %v731_v14 = vld [vmem:[%s1381_s0 + $0x50] sm:$0xff]  ;;  %617 = vrcp.f32 %v651_v32 }
   0x2   :  { %v28_v1 = vld [vmem:[%s1381_s0 + $0x40] sm:$0xff]  ;;  %v75_v3 = vsel %vm38_vm0, %v32_v0, 0.0  ;;  %v705_v7 = vld [vmem:[%s1381_s0 + $0x48] sm:$0xff]  ;;  %v78_v9 = vsel %vm38_vm0, %v700_v6, 0.0  ;;  %v69_v17 = vsel %vm38_vm0, %v731_v14, 0.0  ;;  %v742_v18 = vld [vmem:[%s1381_s0 + $0x58] sm:$0xff] }
   0x3   :  { %v691_v2 = vld [vmem:[%s1381_s0] sm:$0xff]  ;;  %v63_v4 = vsel %vm38_vm0, %v28_v1, 0.0  ;;  %76 = vadd.xlane.f32.xlu1 %v75_v3  ;;  %v710_v8 = vld [vmem:[%s1381_s0 + $0x8] sm:$0xff]  ;;  %v66_v10 = vsel %vm38_vm0, %v705_v7, 0.0  ;;  %v747_v19 = vld [vmem:[%s1381_s0 + $0x70] sm:$0xff]  ;;  %v72_v21 = vsel %vm38_vm0, %v742_v18, 0.0 }
   0x4   :  { %v39_v5 = vsel %vm38_vm0, %v691_v2, 0.0  ;;  %64 = vadd.xlane.f32.xlu0 %v63_v4  ;;  %v42_v11 = vsel %vm38_vm0, %v710_v8, 0.0  ;;  %v721_v12 = vld [vmem:[%s1381_s0 + $0x20] sm:$0xff]  ;;  %v726_v13 = vld [vmem:[%s1381_s0 + $0x28] sm:$0xff]  ;;  %v752_v20 = vld [vmem:[%s1381_s0 + $0x78] sm:$0xff]  ;;  %v81_v22 = vsel %vm38_vm0, %v747_v19, 0.0 }
   0x5   :  { %40 = vadd.xlane.f32.xlu2 %v39_v5  ;;  %v51_v15 = vsel %vm38_vm0, %v721_v12, 0.0  ;;  %v54_v16 = vsel %vm38_vm0, %v726_v13, 0.0  ;;  %v84_v23 = vsel %vm38_vm0, %v752_v20, 0.0  ;;  %v763_v24 = vld [vmem:[%s1381_s0 + $0x10] sm:$0xff]  ;;  %v768_v25 = vld [vmem:[%s1381_s0 + $0x18] sm:$0xff] }
   0x6   :  { %v773_v26 = vld [vmem:[%s1381_s0 + $0x30] sm:$0xff]  ;;  %v45_v27 = vsel %vm38_vm0, %v763_v24, 0.0  ;;  %v48_v28 = vsel %vm38_vm0, %v768_v25, 0.0  ;;  %v784_v30 = vld [vmem:[%s1381_s0 + $0x38] sm:$0xff] }
   0x7   :  { %v57_v29 = vsel %vm38_vm0, %v773_v26, 0.0  ;;  %v60_v31 = vsel %vm38_vm0, %v784_v30, 0.0  ;;  %v618_v33 = vpop.eup %617 }
   0x8   :  { %v88_v34 = vmul.f32 32.0, %v618_v33  ;;  %vm92_vm1 = vweird.f32 %v618_v33 }
   0xa   :  { %v89_v35 = vsub.f32 1.0, %v88_v34 }
   0xb   :  { %79 = vadd.xlane.f32.xlu1 %v78_v9 }
   0xc   :  { %67 = vadd.xlane.f32.xlu0 %v66_v10  ;;  %v90_v36 = vmul.f32 %v618_v33, %v89_v35 }
   0xd   :  { %43 = vadd.xlane.f32.xlu2 %v42_v11 }
   0xe   :  { %v91_v37 = vadd.f32 %v618_v33, %v90_v36 }
  0x10   :  { %v788_v38 = vsel %vm92_vm1, %v618_v33, %v91_v37 }
  0x13   :  { %55 = vadd.xlane.f32.xlu1 %v54_v16 }
  0x14   :  { %52 = vadd.xlane.f32.xlu0 %v51_v15 }
  0x15   :  { %70 = vadd.xlane.f32.xlu2 %v69_v17 }
  0x1b   :  { %82 = vadd.xlane.f32.xlu1 %v81_v22 }
  0x1c   :  { %73 = vadd.xlane.f32.xlu0 %v72_v21 }
  0x1d   :  { %85 = vadd.xlane.f32.xlu2 %v84_v23 }
  0x23   :  { %49 = vadd.xlane.f32.xlu1 %v48_v28 }
  0x24   :  { %46 = vadd.xlane.f32.xlu0 %v45_v27 }
  0x25   :  { %58 = vadd.xlane.f32.xlu2 %v57_v29 }
  0x2c   :  { %61 = vadd.xlane.f32.xlu0 %v60_v31 }
  0x76   :  { %v77_v39 = vpop.xlane.xlu1 %76 }
  0x77   :  { %v65_v40 = vpop.xlane.xlu0 %64  ;;  %v106_v41 = vmul.f32 %v788_v38, %v77_v39 }
  0x78   :  { %v102_v42 = vmul.f32 %v788_v38, %v65_v40  ;;  %v41_v43 = vpop.xlane.xlu2 %40 }
  0x79   :  { %v792_v44 = vsub.f32 %v32_v0, %v106_v41  ;;  %v94_v56 = vmul.f32 %v788_v38, %v41_v43 }
  0x7a   :  { %v794_v45 = vsub.f32 %v28_v1, %v102_v42 }
  0x7b   :  { %v138_v47 = vmul.f32 %v792_v44, %v792_v44  ;;  %v822_v63 = vsub.f32 %v691_v2, %v94_v56 }
  0x7c   :  { %v134_v46 = vmul.f32 %v794_v45, %v794_v45 }
  0x7d   :  { %v178_v49 = vsel %vm38_vm0, %v138_v47, 0.0  ;;  %v126_v10 = vmul.f32 %v822_v63, %v822_v63 }
  0x7e   :  { %v166_v48 = vsel %vm38_vm0, %v134_v46, 0.0  ;;  %v80_v50 = vpop.xlane.xlu1 %79  ;;  %179 = vadd.xlane.f32.xlu0 %v178_v49 }
  0x7f   :  { %v68_v51 = vpop.xlane.xlu0 %67  ;;  %167 = vadd.xlane.f32.xlu1 %v166_v48  ;;  %v107_v52 = vmul.f32 %v788_v38, %v80_v50 }
  0x80   :  { %v103_v53 = vmul.f32 %v788_v38, %v68_v51  ;;  %v44_v54 = vpop.xlane.xlu2 %43 }
  0x81   :  { %v95_v55 = vmul.f32 %v788_v38, %v44_v54  ;;  %v807_v57 = vsub.f32 %v700_v6, %v107_v52 }
  0x82   :  { %v810_v58 = vsub.f32 %v705_v7, %v103_v53 }
  0x83   :  { %v813_v59 = vsub.f32 %v710_v8, %v95_v55  ;;  %v139_v60 = vmul.f32 %v807_v57, %v807_v57 }
  0x84   :  { %v135_v61 = vmul.f32 %v810_v58, %v810_v58 }
  0x85   :  { %v127_v62 = vmul.f32 %v813_v59, %v813_v59  ;;  %v181_v0 = vsel %vm38_vm0, %v139_v60, 0.0 }
  0x86   :  { %v169_v1 = vsel %vm38_vm0, %v135_v61, 0.0  ;;  %v56_v5 = vpop.xlane.xlu1 %55 }
  0x87   :  { %v53_v3 = vpop.xlane.xlu0 %52  ;;  %182 = vadd.xlane.f32.xlu1 %v181_v0  ;;  %170 = vadd.xlane.f32.xlu2 %v169_v1  ;;  %v145_v4 = vsel %vm38_vm0, %v127_v62, 0.0  ;;  %v99_v8 = vmul.f32 %v788_v38, %v56_v5 }
  0x88   :  { %v98_v6 = vmul.f32 %v788_v38, %v53_v3  ;;  %146 = vadd.xlane.f32.xlu0 %v145_v4  ;;  %v71_v7 = vpop.xlane.xlu2 %70 }
  0x89   :  { %v104_v9 = vmul.f32 %v788_v38, %v71_v7  ;;  %v839_v15 = vsub.f32 %v726_v13, %v99_v8 }
  0x8a   :  { %v831_v2 = vsub.f32 %v721_v12, %v98_v6  ;;  %v142_v12 = vsel %vm38_vm0, %v126_v10, 0.0 }
  0x8b   :  { %v836_v11 = vsub.f32 %v731_v14, %v104_v9  ;;  %v131_v29 = vmul.f32 %v839_v15, %v839_v15 }
  0x8c   :  { %v130_v16 = vmul.f32 %v831_v2, %v831_v2 }
  0x8d   :  { %v136_v17 = vmul.f32 %v836_v11, %v836_v11  ;;  %v157_v36 = vsel %vm38_vm0, %v131_v29, 0.0 }
  0x8e   :  { %v154_v21 = vsel %vm38_vm0, %v130_v16, 0.0  ;;  %v83_v14 = vpop.xlane.xlu1 %82 }
  0x8f   :  { %v74_v22 = vpop.xlane.xlu0 %73  ;;  %155 = vadd.xlane.f32.xlu1 %v154_v21  ;;  %143 = vadd.xlane.f32.xlu2 %v142_v12  ;;  %v172_v23 = vsel %vm38_vm0, %v136_v17, 0.0  ;;  %v108_v28 = vmul.f32 %v788_v38, %v83_v14  ;;  %v606_v17 = vld [vmem:[%s1384_s3] sm:$0xff] }
  0x90   :  { %v105_v27 = vmul.f32 %v788_v38, %v74_v22  ;;  %173 = vadd.xlane.f32.xlu0 %v172_v23  ;;  %v86_v13 = vpop.xlane.xlu2 %85 }
  0x91   :  { %v109_v31 = vmul.f32 %v788_v38, %v86_v13  ;;  %v860_v34 = vsub.f32 %v747_v19, %v108_v28 }
  0x92   :  { %v854_v32 = vsub.f32 %v742_v18, %v105_v27 }
  0x93   :  { %v857_v33 = vsub.f32 %v752_v20, %v109_v31  ;;  %v140_v43 = vmul.f32 %v860_v34, %v860_v34 }
  0x94   :  { %v137_v35 = vmul.f32 %v854_v32, %v854_v32 }
  0x95   :  { %v141_v37 = vmul.f32 %v857_v33, %v857_v33  ;;  %v184_v51 = vsel %vm38_vm0, %v140_v43, 0.0 }
  0x96   :  { %v175_v39 = vsel %vm38_vm0, %v137_v35, 0.0  ;;  %v50_v20 = vpop.xlane.xlu1 %49 }
  0x97   :  { %176 = vadd.xlane.f32.xlu1 %v175_v39  ;;  %v47_v40 = vpop.xlane.xlu0 %46  ;;  %158 = vadd.xlane.f32.xlu2 %v157_v36  ;;  %v187_v18 = vsel %vm38_vm0, %v141_v37, 0.0  ;;  %v97_v42 = vmul.f32 %v788_v38, %v50_v20 }
  0x98   :  { %v96_v41 = vmul.f32 %v788_v38, %v47_v40  ;;  %188 = vadd.xlane.f32.xlu0 %v187_v18  ;;  %v59_v19 = vpop.xlane.xlu2 %58 }
  0x99   :  { %v100_v46 = vmul.f32 %v788_v38, %v59_v19  ;;  %v881_v49 = vsub.f32 %v768_v25, %v97_v42 }
  0x9a   :  { %v875_v47 = vsub.f32 %v763_v24, %v96_v41 }
  0x9b   :  { %v878_v48 = vsub.f32 %v773_v26, %v100_v46  ;;  %v129_v25 = vmul.f32 %v881_v49, %v881_v49 }
  0x9c   :  { %v128_v50 = vmul.f32 %v875_v47, %v875_v47 }
  0x9d   :  { %v132_v52 = vmul.f32 %v878_v48, %v878_v48  ;;  %v151_v60 = vsel %vm38_vm0, %v129_v25, 0.0 }
  0x9e   :  { %v148_v53 = vsel %vm38_vm0, %v128_v50, 0.0 }
  0x9f   :  { %149 = vadd.xlane.f32.xlu1 %v148_v53  ;;  %v62_v54 = vpop.xlane.xlu0 %61  ;;  %185 = vadd.xlane.f32.xlu2 %v184_v51  ;;  %v160_v24 = vsel %vm38_vm0, %v132_v52, 0.0 }
  0xa0   :  { %v101_v26 = vmul.f32 %v788_v38, %v62_v54  ;;  %161 = vadd.xlane.f32.xlu0 %v160_v24 }
  0xa2   :  { %v894_v55 = vsub.f32 %v784_v30, %v101_v26  ;;  %v607_v30 = vld [vmem:[%s1384_s3 + $0x8] sm:$0xff] }
  0xa3   :  { %609 = vmatpush.bf16.msra.mxu2 %v607_v30  ;;  %610 = vmatpush.bf16.msra.mxu3 %v607_v30 }
  0xa4   :  { %v133_v56 = vmul.f32 %v894_v55, %v894_v55  ;;  %506 = vmatpush.bf16.msra.mxu0 %v607_v30  ;;  %608 = vmatpush.bf16.msra.mxu1 %v607_v30 }
  0xa6   :  { %v163_v61 = vsel %vm38_vm0, %v133_v56, 0.0 }
  0xa7   :  { %164 = vadd.xlane.f32.xlu1 %v163_v61  ;;  %152 = vadd.xlane.f32.xlu2 %v151_v60 }
  0xa8   :  { %612 = vmatpush.bf16.msra.mxu2 %v606_v17  ;;  %613 = vmatpush.bf16.msra.mxu3 %v606_v17 }
  0xa9   :  { %507 = vmatpush.bf16.msra.mxu0 %v606_v17  ;;  %611 = vmatpush.bf16.msra.mxu1 %v606_v17  ;;  %v981_v17 = vld [vmem:[%s1383_s2] ss:$0 sm:$0xff] }
  0xf1   :  { %v180_v0 = vpop.xlane.xlu0 %179 }
  0xf2   :  { %v168_v62 = vpop.xlane.xlu1 %167  ;;  %v202_v3 = vmul.f32 %v180_v0, %v788_v38  ;;  %v960_v0 = vld [vmem:[%s1382_s1] ss:$0 sm:$0xff] }
  0xf3   :  { %v198_v1 = vmul.f32 %v168_v62, %v788_v38 }
  0xf4   :  { %v902_v5 = vadd.f32 1e-05, %v202_v3 }
  0xf5   :  { %v214_v4 = vadd.f32 1e-05, %v198_v1 }
  0xf6   :  { %vm348_vm6 = vweird.f32 %v902_v5 }
  0xf7   :  { %619 = vrsqrt.f32 %v214_v4  ;;  %vm308_vm3 = vweird.f32 %v214_v4 }
  0xf8   :  { %621 = vrsqrt.f32 %v902_v5 }
  0xfa   :  { %v183_v6 = vpop.xlane.xlu1 %182  ;;  %v171_v7 = vpop.xlane.xlu2 %170 }
  0xfb   :  { %v203_v8 = vmul.f32 %v183_v6, %v788_v38  ;;  %v147_v9 = vpop.xlane.xlu0 %146  ;;  %v199_v10 = vmul.f32 %v171_v7, %v788_v38 }
  0xfc   :  { %v191_v16 = vmul.f32 %v147_v9, %v788_v38 }
  0xfd   :  { %v620_v21 = vpop.eup %619  ;;  %v914_v12 = vadd.f32 1e-05, %v203_v8  ;;  %v916_v22 = vadd.f32 1e-05, %v199_v10 }
  0xfe   :  { %v918_v23 = vpop.eup %621  ;;  %v303_v14 = vmul.f32 %v620_v21, %v214_v4  ;;  %v920_v27 = vadd.f32 1e-05, %v191_v16  ;;  %vm309_vm2 = vweird.f32 %v620_v21 }
  0xff   :  { %v343_v13 = vmul.f32 %v918_v23, %v902_v5  ;;  %623 = vrsqrt.f32 %v914_v12  ;;  %vm349_vm4 = vweird.f32 %v918_v23  ;;  %vm310_vm5 = vmor %vm308_vm3, %vm309_vm2  ;;  %vm358_vm7 = vweird.f32 %v914_v12 }
 0x100   :  { %v304_v28 = vmul.f32 %v620_v21, %v303_v14  ;;  %625 = vrsqrt.f32 %v920_v27  ;;  %vm964_vm8 = vmor %vm348_vm6, %vm349_vm4  ;;  %vm238_vm9 = vweird.f32 %v920_v27  ;;  %vm318_vm10 = vweird.f32 %v916_v22 }
 0x101   :  { %v344_v29 = vmul.f32 %v918_v23, %v343_v13  ;;  %627 = vrsqrt.f32 %v916_v22 }
 0x102   :  { %v305_v31 = vmul.f32 0.5, %v304_v28  ;;  %v156_v35 = vpop.xlane.xlu1 %155  ;;  %v144_v36 = vpop.xlane.xlu2 %143 }
 0x103   :  { %v345_v37 = vmul.f32 0.5, %v344_v29  ;;  %v194_v39 = vmul.f32 %v156_v35, %v788_v38  ;;  %v174_v40 = vpop.xlane.xlu0 %173  ;;  %v190_v18 = vmul.f32 %v144_v36, %v788_v38 }
 0x104   :  { %v306_v20 = vsub.f32 1.5, %v305_v31  ;;  %v200_v41 = vmul.f32 %v174_v40, %v788_v38 }
 0x105   :  { %v931_v19 = vpop.eup %623  ;;  %v346_v42 = vsub.f32 1.5, %v345_v37  ;;  %v933_v43 = vadd.f32 1e-05, %v194_v39  ;;  %v948_v26 = vadd.f32 1e-05, %v190_v18 }
 0x106   :  { %v935_v46 = vpop.eup %625  ;;  %v307_v50 = vmul.f32 %v620_v21, %v306_v20  ;;  %v353_v51 = vmul.f32 %v931_v19, %v914_v12  ;;  %v940_v52 = vadd.f32 1e-05, %v200_v41  ;;  %vm359_vm11 = vweird.f32 %v931_v19 }
 0x107   :  { %v942_v53 = vpop.eup %627  ;;  %v347_v54 = vmul.f32 %v918_v23, %v346_v42  ;;  %v233_v24 = vmul.f32 %v935_v46, %v920_v27  ;;  %629 = vrsqrt.f32 %v933_v43  ;;  %vm239_vm13 = vweird.f32 %v935_v46  ;;  %vm1001_vm15 = vmor %vm358_vm7, %vm359_vm11 }
 0x108   :  { %v311_v25 = vsel %vm310_vm5, %v620_v21, %v307_v50  ;;  %v354_v56 = vmul.f32 %v931_v19, %v353_v51  ;;  %v313_v60 = vmul.f32 %v942_v53, %v916_v22  ;;  %631 = vrsqrt.f32 %v940_v52  ;;  %vm1044_vm4 = vmor %vm238_vm9, %vm239_vm13 }
 0x109   :  { %v390_v61 = vmul.f32 %v311_v25, %v794_v45  ;;  %v234_v62 = vmul.f32 %v935_v46, %v233_v24  ;;  %v351_v30 = vsel %vm964_vm8, %v918_v23, %v347_v54  ;;  %633 = vrsqrt.f32 %v948_v26 }
 0x10a   :  { %v355_v3 = vmul.f32 0.5, %v354_v56  ;;  %v314_v45 = vmul.f32 %v942_v53, %v313_v60  ;;  %v177_v4 = vpop.xlane.xlu1 %176  ;;  %v159_v5 = vpop.xlane.xlu2 %158  ;;  %vm319_vm12 = vweird.f32 %v942_v53  ;;  %v394_v35 = vmul.f32 %v351_v30, %v792_v44 }
 0x10b   :  { %v235_v6 = vmul.f32 0.5, %v234_v62  ;;  %v189_v7 = vpop.xlane.xlu0 %188  ;;  %v201_v10 = vmul.f32 %v177_v4, %v788_v38  ;;  %v195_v14 = vmul.f32 %v159_v5, %v788_v38  ;;  %v409_v13 = vmul.f32 %v960_v0, %v390_v61  ;;  %vm320_vm1 = vmor %vm318_vm10, %vm319_vm12 }
 0x10c   :  { %v356_v8 = vsub.f32 1.5, %v355_v3  ;;  %v315_v9 = vmul.f32 0.5, %v314_v45  ;;  %v205_v16 = vmul.f32 %v189_v7, %v788_v38  ;;  %vm268_vm14 = vweird.f32 %v933_v43 }
 0x10d   :  { %v983_v21 = vpop.eup %629  ;;  %v236_v23 = vsub.f32 1.5, %v235_v6  ;;  %v995_v36 = vadd.f32 1e-05, %v201_v10  ;;  %v1010_v44 = vadd.f32 %v981_v17, %v409_v13  ;;  %vm328_vm2 = vweird.f32 %v940_v52 }
 0x10e   :  { %v357_v28 = vmul.f32 %v931_v19, %v356_v8  ;;  %v316_v29 = vsub.f32 1.5, %v315_v9  ;;  %v263_v31 = vmul.f32 %v983_v21, %v933_v43  ;;  %v997_v37 = vpop.eup %631  ;;  %v1007_v20 = vadd.f32 1e-05, %v205_v16 }
 0x10f   :  { %v1012_v41 = vpop.eup %633  ;;  %v237_v42 = vmul.f32 %v935_v46, %v236_v23  ;;  %v323_v12 = vmul.f32 %v997_v37, %v940_v52  ;;  %v1022_v50 = vadd.f32 1e-05, %v195_v14  ;;  %vm228_vm3 = vweird.f32 %v948_v26  ;;  %444 = vst.msk [vmem:[%s1385_s4 + $0x40] sm:$0xff] %vm38_vm0, %v1010_v44 }
 0x110   :  { %v317_v40 = vmul.f32 %v942_v53, %v316_v29  ;;  %v264_v18 = vmul.f32 %v983_v21, %v263_v31  ;;  %v361_v51 = vsel %vm1001_vm15, %v931_v19, %v357_v28  ;;  %v223_v25 = vmul.f32 %v1012_v41, %v948_v26 }
 0x111   :  { %v324_v56 = vmul.f32 %v997_v37, %v323_v12  ;;  %635 = vrsqrt.f32 %v995_v36  ;;  %v413_v60 = vmul.f32 %v960_v0, %v394_v35  ;;  %vm269_vm5 = vweird.f32 %v983_v21 }
 0x112   :  { %v321_v54 = vsel %vm320_vm1, %v942_v53, %v317_v40  ;;  %v265_v24 = vmul.f32 0.5, %v264_v18  ;;  %v150_v19 = vpop.xlane.xlu1 %149  ;;  %637 = vrsqrt.f32 %v1007_v20  ;;  %v186_v1 = vpop.xlane.xlu2 %185  ;;  %v395_v3 = vmul.f32 %v361_v51, %v807_v57  ;;  %vm1069_vm7 = vmor %vm268_vm14, %vm269_vm5 }
 0x113   :  { %v391_v22 = vmul.f32 %v321_v54, %v810_v58  ;;  %v162_v53 = vpop.xlane.xlu0 %161  ;;  %v224_v58 = vmul.f32 %v1012_v41, %v223_v25  ;;  %v241_v45 = vsel %vm1044_vm4, %v935_v46, %v237_v42  ;;  %v325_v4 = vmul.f32 0.5, %v324_v56 }
 0x114   :  { %v266_v62 = vsub.f32 1.5, %v265_v24  ;;  %639 = vrsqrt.f32 %v1022_v50  ;;  %v192_v30 = vmul.f32 %v150_v19, %v788_v38  ;;  %v196_v6 = vmul.f32 %v162_v53, %v788_v38 }
 0x115   :  { %v225_v5 = vmul.f32 0.5, %v224_v58  ;;  %v326_v7 = vsub.f32 1.5, %v325_v4  ;;  %vm329_vm6 = vweird.f32 %v997_v37  ;;  %v204_v8 = vmul.f32 %v186_v1, %v788_v38 }
 0x116   :  { %v267_v27 = vmul.f32 %v983_v21, %v266_v62  ;;  %v410_v57 = vmul.f32 %v960_v0, %v391_v22  ;;  %v1063_v9 = vmul.f32 %v241_v45, %v813_v59  ;;  %vm229_vm8 = vweird.f32 %v1012_v41  ;;  %vm1089_vm9 = vmor %vm328_vm2, %vm329_vm6 }
 0x117   :  { %v226_v10 = vsub.f32 1.5, %v225_v5  ;;  %v1074_v16 = vadd.f32 1e-05, %v192_v30  ;;  %v1076_v23 = vpop.eup %635  ;;  %v327_v14 = vmul.f32 %v997_v37, %v326_v7  ;;  %v1082_v13 = vadd.f32 1e-05, %v196_v6  ;;  %vm1109_vm11 = vmor %vm228_vm3, %vm229_vm8 }
 0x118   :  { %v271_v59 = vsel %vm1069_vm7, %v983_v21, %v267_v27  ;;  %v429_v43 = vadd.f32 %v981_v17, %v410_v57  ;;  %v1085_v28 = vpop.eup %637  ;;  %v333_v35 = vmul.f32 %v1076_v23, %v995_v36  ;;  %vm338_vm10 = vweird.f32 %v995_v36 }
 0x119   :  { %v227_v31 = vmul.f32 %v1012_v41, %v226_v10  ;;  %641 = vrsqrt.f32 %v1074_v16  ;;  %v1098_v21 = vadd.f32 1e-05, %v204_v8  ;;  %v331_v52 = vsel %vm1089_vm9, %v997_v37, %v327_v14 }
 0x11a   :  { %v1100_v39 = vpop.eup %639  ;;  %v373_v18 = vmul.f32 %v1085_v28, %v1007_v20  ;;  %vm378_vm12 = vweird.f32 %v1007_v20  ;;  %445 = vst.msk [vmem:[%s1385_s4 + $0x48] sm:$0xff] %vm38_vm0, %v429_v43  ;;  %v414_v37 = vmul.f32 %v960_v0, %v395_v3  ;;  %v1122_v42 = vmul.f32 %v271_v59, %v831_v2  ;;  %v165_v2 = vpop.xlane.xlu1 %164 }
 0x11b   :  { %v231_v26 = vsel %vm1109_vm11, %v1012_v41, %v227_v31  ;;  %v334_v12 = vmul.f32 %v1076_v23, %v333_v35  ;;  %v273_v51 = vmul.f32 %v1100_v39, %v1022_v50  ;;  %vm278_vm13 = vweird.f32 %v1022_v50  ;;  %v153_v22 = vpop.xlane.xlu2 %152 }
 0x11c   :  { %vm339_vm14 = vweird.f32 %v1076_v23  ;;  %v374_v54 = vmul.f32 %v1085_v28, %v373_v18  ;;  %vm379_vm15 = vweird.f32 %v1085_v28  ;;  %643 = vrsqrt.f32 %v1082_v13 }
 0x11d   :  { %v1136_v24 = vmul.f32 %v331_v52, %v836_v11  ;;  %v335_v41 = vmul.f32 0.5, %v334_v12  ;;  %v274_v25 = vmul.f32 %v1100_v39, %v273_v51  ;;  %645 = vrsqrt.f32 %v1098_v21  ;;  %vm1169_vm4 = vmor %vm338_vm10, %vm339_vm14 }
 0x11e   :  { %v382_v56 = vmul.f32 %v231_v26, %v822_v63  ;;  %v375_v19 = vmul.f32 0.5, %v374_v54  ;;  %v456_v53 = vpack.c.bf16 %v429_v43, %v1010_v44  ;;  %v432_v61 = vadd.f32 %v981_v17, %v413_v60  ;;  %vm1185_vm6 = vmor %vm378_vm12, %vm379_vm15 }
 0x11f   :  { %v1143_v62 = vpop.eup %641  ;;  %v336_v58 = vsub.f32 1.5, %v335_v41  ;;  %v275_v1 = vmul.f32 0.5, %v274_v25  ;;  %v433_v11 = vadd.f32 %v981_v17, %v414_v37  ;;  %v197_v3 = vmul.f32 %v165_v2, %v788_v38 }
 0x120   :  { %v376_v45 = vsub.f32 1.5, %v375_v19  ;;  %vm279_vm1 = vweird.f32 %v1100_v39  ;;  %v243_v4 = vmul.f32 %v1143_v62, %v1074_v16  ;;  %vm248_vm2 = vweird.f32 %v1074_v16  ;;  %602 = vmatmul.msk.bf16.vlgmr.msra.gmra.mxu2 %vm38_vm0, %v456_v53  ;;  %448 = vst.msk [vmem:[%s1385_s4 + $0x60] sm:$0xff] %vm38_vm0, %v432_v61 }
 0x121   :  { %v193_v63 = vmul.f32 %v153_v22, %v788_v38  ;;  %v337_v44 = vmul.f32 %v1076_v23, %v336_v58  ;;  %v276_v60 = vsub.f32 1.5, %v275_v1  ;;  %vm288_vm3 = vweird.f32 %v1082_v13  ;;  %449 = vst.msk [vmem:[%s1385_s4 + $0x68] sm:$0xff] %vm38_vm0, %v433_v11  ;;  %vm280_vm7 = vmor %vm278_vm13, %vm279_vm1 }
 0x122   :  { %v458_v27 = vpack.c.bf16 %v433_v11, %v432_v61  ;;  %v1163_v5 = vpop.eup %643  ;;  %v377_v38 = vmul.f32 %v1085_v28, %v376_v45  ;;  %v244_v6 = vmul.f32 %v1143_v62, %v243_v4  ;;  %vm249_vm5 = vweird.f32 %v1143_v62 }
 0x123   :  { %v1176_v7 = vadd.f32 1e-05, %v197_v3  ;;  %v646_v8 = vpop.eup %645  ;;  %v341_v57 = vsel %vm1169_vm4, %v1076_v23, %v337_v44  ;;  %v277_v46 = vmul.f32 %v1100_v39, %v276_v60  ;;  %v283_v10 = vmul.f32 %v1163_v5, %v1082_v13  ;;  %vm250_vm11 = vmor %vm248_vm2, %vm249_vm5 }
 0x124   :  { %604 = vmatmul.msk.bf16.vlgmr.msra.gmra.mxu3 %vm38_vm0, %v458_v27  ;;  %v1193_v59 = vadd.f32 1e-05, %v193_v63  ;;  %v381_v23 = vsel %vm1185_vm6, %v1085_v28, %v377_v38  ;;  %v245_v20 = vmul.f32 0.5, %v244_v6  ;;  %v363_v14 = vmul.f32 %v646_v8, %v1098_v21 }
 0x125   :  { %vm368_vm8 = vweird.f32 %v1098_v21  ;;  %v401_v43 = vmul.f32 %v960_v0, %v382_v56  ;;  %v393_v29 = vmul.f32 %v341_v57, %v854_v32  ;;  %v281_v31 = vsel %vm280_vm7, %v1100_v39, %v277_v46 }
 0x126   :  { %v284_v35 = vmul.f32 %v1163_v5, %v283_v10  ;;  %vm289_vm9 = vweird.f32 %v1163_v5  ;;  %v387_v28 = vmul.f32 %v281_v31, %v839_v15  ;;  %v246_v52 = vsub.f32 1.5, %v245_v20 }
 0x127   :  { %v364_v50 = vmul.f32 %v646_v8, %v363_v14  ;;  %647 = vrsqrt.f32 %v1176_v7  ;;  %v397_v40 = vmul.f32 %v381_v23, %v857_v33  ;;  %vm369_vm10 = vweird.f32 %v646_v8  ;;  %vm290_vm12 = vmor %vm288_vm3, %vm289_vm9 }
 0x128   :  { %v285_v18 = vmul.f32 0.5, %v284_v35  ;;  %649 = vrsqrt.f32 %v1193_v59  ;;  %v247_v32 = vmul.f32 %v1143_v62, %v246_v52  ;;  %v402_v39 = vmul.f32 %v960_v0, %v1063_v9  ;;  %vm370_vm13 = vmor %vm368_vm8, %vm369_vm10 }
 0x129   :  { %v365_v37 = vmul.f32 0.5, %v364_v50  ;;  %v420_v26 = vadd.f32 %v981_v17, %v401_v43  ;;  %v405_v33 = vmul.f32 %v960_v0, %v1122_v42  ;;  %v406_v12 = vmul.f32 %v960_v0, %v387_v28 }
 0x12a   :  { %v286_v15 = vsub.f32 1.5, %v285_v18  ;;  %v411_v51 = vmul.f32 %v960_v0, %v1136_v24  ;;  %v251_v54 = vsel %vm250_vm11, %v1143_v62, %v247_v32  ;;  %v421_v9 = vadd.f32 %v981_v17, %v402_v39 }
 0x12b   :  { %v366_v2 = vsub.f32 1.5, %v365_v37  ;;  %436 = vst.msk [vmem:[%s1385_s4] sm:$0xff] %vm38_vm0, %v420_v26  ;;  %v412_v16 = vmul.f32 %v960_v0, %v393_v29  ;;  %v384_v41 = vmul.f32 %v251_v54, %v875_v47  ;;  %v424_v25 = vadd.f32 %v981_v17, %v405_v33 }
 0x12c   :  { %v287_v42 = vmul.f32 %v1163_v5, %v286_v15  ;;  %v425_v24 = vadd.f32 %v981_v17, %v406_v12  ;;  %437 = vst.msk [vmem:[%s1385_s4 + $0x8] sm:$0xff] %vm38_vm0, %v421_v9  ;;  %v452_v19 = vpack.c.bf16 %v421_v9, %v420_v26  ;;  %v430_v47 = vadd.f32 %v981_v17, %v411_v51 }
 0x12d   :  { %v648_v22 = vpop.eup %647  ;;  %v367_v56 = vmul.f32 %v646_v8, %v366_v2  ;;  %v431_v53 = vadd.f32 %v981_v17, %v412_v16  ;;  %440 = vst.msk [vmem:[%s1385_s4 + $0x20] sm:$0xff] %vm38_vm0, %v424_v25  ;;  %v416_v63 = vmul.f32 %v960_v0, %v397_v40  ;;  %v403_v44 = vmul.f32 %v960_v0, %v384_v41 }
 0x12e   :  { %v650_v61 = vpop.eup %649  ;;  %v291_v62 = vsel %vm290_vm12, %v1163_v5, %v287_v42  ;;  %v293_v13 = vmul.f32 %v648_v22, %v1176_v7  ;;  %v454_v58 = vpack.c.bf16 %v425_v24, %v424_v25  ;;  %598 = vmatmul.msk.bf16.vlgmr.msra.gmra.mxu0 %vm38_vm0, %v452_v19  ;;  %441 = vst.msk [vmem:[%s1385_s4 + $0x28] sm:$0xff] %vm38_vm0, %v425_v24  ;;  %vm299_vm14 = vweird.f32 %v648_v22 }
 0x12f   :  { %v388_v1 = vmul.f32 %v291_v62, %v878_v48  ;;  %v371_v11 = vsel %vm370_vm13, %v646_v8, %v367_v56  ;;  %v253_v3 = vmul.f32 %v650_v61, %v1193_v59  ;;  %446 = vst.msk [vmem:[%s1385_s4 + $0x50] sm:$0xff] %vm38_vm0, %v430_v47  ;;  %v457_v48 = vpack.c.bf16 %v431_v53, %v430_v47 }
 0x130   :  { %v396_v21 = vmul.f32 %v371_v11, %v860_v34  ;;  %v294_v45 = vmul.f32 %v648_v22, %v293_v13  ;;  %600 = vmatmul.msk.bf16.vlgmr.msra.gmra.mxu1 %vm38_vm0, %v454_v58  ;;  %447 = vst.msk [vmem:[%s1385_s4 + $0x58] sm:$0xff] %vm38_vm0, %v431_v53  ;;  %v435_v30 = vadd.f32 %v981_v17, %v416_v63  ;;  %vm259_vm15 = vweird.f32 %v650_v61 }
 0x131   :  { %v254_v4 = vmul.f32 %v650_v61, %v253_v3  ;;  %v407_v34 = vmul.f32 %v960_v0, %v388_v1  ;;  %603 = vmatmul.msk.bf16.gmra.mxu2 %vm38_vm0, %v457_v48  ;;  %v422_v38 = vadd.f32 %v981_v17, %v403_v44  ;;  %vm298_vm1 = vweird.f32 %v1176_v7 }
 0x132   :  { %v295_v60 = vmul.f32 0.5, %v294_v45  ;;  %v415_v27 = vmul.f32 %v960_v0, %v396_v21  ;;  %451 = vst.msk [vmem:[%s1385_s4 + $0x78] sm:$0xff] %vm38_vm0, %v435_v30  ;;  %vm300_vm2 = vmor %vm298_vm1, %vm299_vm14  ;;  %vm258_vm3 = vweird.f32 %v1193_v59  ;;  %vm565_vm5 = vcmask 257024  }
 0x133   :  { %v255_v5 = vmul.f32 0.5, %v254_v4  ;;  %v426_v57 = vadd.f32 %v981_v17, %v407_v34  ;;  %438 = vst.msk [vmem:[%s1385_s4 + $0x10] sm:$0xff] %vm38_vm0, %v422_v38  ;;  %vm260_vm4 = vmor %vm258_vm3, %vm259_vm15 }
 0x134   :  { %v296_v6 = vsub.f32 1.5, %v295_v60  ;;  %v434_v8 = vadd.f32 %v981_v17, %v415_v27 }
 0x135   :  { %v256_v36 = vsub.f32 1.5, %v255_v5  ;;  %442 = vst.msk [vmem:[%s1385_s4 + $0x30] sm:$0xff] %vm38_vm0, %v426_v57 }
 0x136   :  { %v297_v46 = vmul.f32 %v648_v22, %v296_v6  ;;  %450 = vst.msk [vmem:[%s1385_s4 + $0x70] sm:$0xff] %vm38_vm0, %v434_v8  ;;  %v459_v10 = vpack.c.bf16 %v435_v30, %v434_v8 }
 0x137   :  { %v257_v23 = vmul.f32 %v650_v61, %v256_v36 }
 0x138   :  { %v301_v20 = vsel %vm300_vm2, %v648_v22, %v297_v46  ;;  %605 = vmatmul.msk.bf16.gmra.mxu3 %vm38_vm0, %v459_v10 }
 0x139   :  { %v389_v7 = vmul.f32 %v301_v20, %v894_v55  ;;  %v261_v14 = vsel %vm260_vm4, %v650_v61, %v257_v23 }
 0x13a   :  { %v385_v43 = vmul.f32 %v261_v14, %v881_v49 }
 0x13b   :  { %v408_v59 = vmul.f32 %v960_v0, %v389_v7 }
 0x13c   :  { %v404_v29 = vmul.f32 %v960_v0, %v385_v43 }
 0x13d   :  { %v427_v31 = vadd.f32 %v981_v17, %v408_v59 }
 0x13e   :  { %v423_v35 = vadd.f32 %v981_v17, %v404_v29 }
 0x13f   :  { %443 = vst.msk [vmem:[%s1385_s4 + $0x38] sm:$0xff] %vm38_vm0, %v427_v31  ;;  %v455_v28 = vpack.c.bf16 %v427_v31, %v426_v57 }
 0x140   :  { %439 = vst.msk [vmem:[%s1385_s4 + $0x18] sm:$0xff] %vm38_vm0, %v423_v35  ;;  %v453_v49 = vpack.c.bf16 %v423_v35, %v422_v38 }
 0x141   :  { %601 = vmatmul.msk.bf16.gmra.mxu1 %vm38_vm0, %v455_v28 }
 0x142   :  { %599 = vmatmul.msk.bf16.gmra.mxu0 %vm38_vm0, %v453_v49 }
 0x1a3   :  { %v529_v55 = vpop.f32.mrf.mxu2 }
 0x1a4   :  { %v557_v0 = vpack.c.bf16 %v529_v55, %v529_v55 }
 0x1a6   :  { %574 = vst.msk [vmem:[%s1386_s5 + $0x20] sm:$0xf] %vm565_vm5, %v557_v0 }
 0x1a7   :  { %v539_v17 = vpop.f32.mrf.mxu3 }
 0x1a8   :  { %v561_v52 = vpack.c.bf16 %v539_v17, %v539_v17 }
 0x1aa   :  { %578 = vst.msk [vmem:[%s1386_s5 + $0x30] sm:$0xf] %vm565_vm5, %v561_v52 }
 0x1ab   :  { %v509_v50 = vpop.f32.mrf.mxu0  ;;  %v531_v40 = vpop.f32.mrf.mxu2 }
 0x1ac   :  { %v549_v18 = vpack.c.bf16 %v509_v50, %v509_v50  ;;  %v558_v32 = vpack.c.bf16 %v531_v40, %v531_v40 }
 0x1ad   :  { %v519_v37 = vpop.f32.mrf.mxu1 }
 0x1ae   :  { %v553_v39 = vpack.c.bf16 %v519_v37, %v519_v37  ;;  %566 = vst.msk [vmem:[%s1386_s5] sm:$0xf] %vm565_vm5, %v549_v18 }
 0x1af   :  { %v541_v26 = vpop.f32.mrf.mxu3  ;;  %575 = vst.msk [vmem:[%s1386_s5 + $0x24] sm:$0xf] %vm565_vm5, %v558_v32 }
 0x1b0   :  { %v562_v15 = vpack.c.bf16 %v541_v26, %v541_v26  ;;  %570 = vst.msk [vmem:[%s1386_s5 + $0x10] sm:$0xf] %vm565_vm5, %v553_v39 }
 0x1b2   :  { %579 = vst.msk [vmem:[%s1386_s5 + $0x34] sm:$0xf] %vm565_vm5, %v562_v15 }
 0x1b3   :  { %v511_v33 = vpop.f32.mrf.mxu0 }
 0x1b4   :  { %v550_v12 = vpack.c.bf16 %v511_v33, %v511_v33  ;;  %v534_v51 = vpop.f32.mrf.mxu2 }
 0x1b5   :  { %v521_v54 = vpop.f32.mrf.mxu1  ;;  %v559_v2 = vpack.c.bf16 %v534_v51, %v534_v51 }
 0x1b6   :  { %v554_v9 = vpack.c.bf16 %v521_v54, %v521_v54  ;;  %567 = vst.msk [vmem:[%s1386_s5 + $0x4] sm:$0xf] %vm565_vm5, %v550_v12 }
 0x1b7   :  { %576 = vst.msk [vmem:[%s1386_s5 + $0x28] sm:$0xf] %vm565_vm5, %v559_v2 }
 0x1b8   :  { %571 = vst.msk [vmem:[%s1386_s5 + $0x14] sm:$0xf] %vm565_vm5, %v554_v9 }
 0x1bb   :  { %v544_v16 = vpop.f32.mrf.mxu3 }
 0x1bc   :  { %v563_v41 = vpack.c.bf16 %v544_v16, %v544_v16  ;;  %v536_v42 = vpop.f32.mrf.mxu2 }
 0x1bd   :  { %v560_v25 = vpack.c.bf16 %v536_v42, %v536_v42 }
 0x1be   :  { %580 = vst.msk [vmem:[%s1386_s5 + $0x38] sm:$0xf] %vm565_vm5, %v563_v41  ;;  %v524_v24 = vpop.f32.mrf.mxu1 }
 0x1bf   :  { %v514_v22 = vpop.f32.mrf.mxu0  ;;  %v555_v56 = vpack.c.bf16 %v524_v24, %v524_v24  ;;  %577 = vst.msk [vmem:[%s1386_s5 + $0x2c] sm:$0xf] %vm565_vm5, %v560_v25 }
 0x1c0   :  { %v551_v19 = vpack.c.bf16 %v514_v22, %v514_v22 }
 0x1c1   :  { %572 = vst.msk [vmem:[%s1386_s5 + $0x18] sm:$0xf] %vm565_vm5, %v555_v56 }
 0x1c2   :  { %568 = vst.msk [vmem:[%s1386_s5 + $0x8] sm:$0xf] %vm565_vm5, %v551_v19 }
 0x1c3   :  { %v546_v47 = vpop.f32.mrf.mxu3 }
 0x1c4   :  { %v564_v53 = vpack.c.bf16 %v546_v47, %v546_v47 }
 0x1c6   :  { %581 = vst.msk [vmem:[%s1386_s5 + $0x3c] sm:$0xf] %vm565_vm5, %v564_v53  ;;  %v526_v61 = vpop.f32.mrf.mxu1 }
 0x1c7   :  { %v516_v62 = vpop.f32.mrf.mxu0  ;;  %v556_v13 = vpack.c.bf16 %v526_v61, %v526_v61 }
 0x1c8   :  { %v552_v58 = vpack.c.bf16 %v516_v62, %v516_v62 }
 0x1c9   :  { %573 = vst.msk [vmem:[%s1386_s5 + $0x1c] sm:$0xf] %vm565_vm5, %v556_v13 }
 0x1ca   :  { %569 = vst.msk [vmem:[%s1386_s5 + $0xc] sm:$0xf] %vm565_vm5, %v552_v58 }

</bundles_post_ra>
